<compile_context>
chip_gen: v7x
topology: tpu7x:2x2x1
jax: 0.10.0
libtpu: 0.0.40
codegen_flags: <defaults>
</compile_context>

<pallas_src>
import functools

import jax
import jax.numpy as jnp
from jax.experimental import pallas as pl
from jax.experimental.pallas import tpu as pltpu


def _round_up(a, b):
    return ((a + b - 1) // b) * b


def _gen_defaults():
    """(max_block_bytes, vmem_limit_bytes, fused_sample_limit_bytes_f32)."""
    kind = ""
    try:
        kind = jax.devices()[0].device_kind.lower()
    except Exception:
        pass
    if "v7" in kind:
        # 64 MiB VMEM per TC: modest blocks, leave headroom.
        return 4 << 20, 48 << 20, 6 << 20
    if "v6" in kind:
        # 128 MiB VMEM, ~1.4 TB/s HBM: bigger blocks to amortize step overhead.
        return 8 << 20, 96 << 20, 12 << 20
    # v5e / v5p / v4 / unknown: 128 MiB VMEM, lower HBM BW -> tiles matter less.
    return 4 << 20, 80 << 20, 12 << 20


# ---------------------------------------------------------------------------
# Fused single-pass kernel: pool + tiny MLP + (1+f)*x, one HBM read of x.
# ---------------------------------------------------------------------------
def _fused_kernel(x_ref, w1t_ref, b1_ref, w2_ref, b2_ref, o_ref, *, inv_s):
    # x_ref: (1, C, S); w1t: (C, Cr); b1: (1, Cr); w2: (C, Cr); b2: (C, 1).
    x = x_ref[0].astype(jnp.float32)                            # (C, S)
    avg = jnp.sum(x, axis=-1, keepdims=True) * inv_s            # (C, 1)
    # h = ReLU(W1 @ avg + b1)   -> row vector (1, Cr), sublane reduce.
    h = jnp.maximum(
        jnp.sum(w1t_ref[...] * avg, axis=0, keepdims=True) + b1_ref[...], 0.0)
    # f = ReLU(W2 @ h + b2)     -> column vector (C, 1), lane reduce.
    f = jnp.maximum(
        jnp.sum(w2_ref[...] * h, axis=-1, keepdims=True) + b2_ref[...], 0.0)
    # out = f*x + x = (1 + f) * x, computed in f32, cast on store.
    o_ref[...] = (x * (1.0 + f)).astype(o_ref.dtype)[None]


# ---------------------------------------------------------------------------
# Pass 1 (tiled path): per-channel spatial sum, f32 accumulate, tail masked.
# ---------------------------------------------------------------------------
def _pool_sum_kernel(x_ref, part_ref, *, St, S, n_half):
    # x_ref block: (1, C, St); part_ref block: (1, 1, C, 1), resident over s.
    @pl.when(pl.program_id(2) == 0)
    def _():
        part_ref[...] = jnp.zeros_like(part_ref)

    # Global tile index (unclamped): phantom / tail tiles mask to zero.
    t = pl.program_id(1) * n_half + pl.program_id(2)
    start = t * St
    lane = jax.lax.broadcasted_iota(jnp.int32, (1, St), 1)
    valid = (start + lane) < S
    x = jnp.where(valid, x_ref[0].astype(jnp.float32), 0.0)     # (C, St)
    part_ref[...] += jnp.sum(x, axis=-1, keepdims=True)[None, None, :, :]


# ---------------------------------------------------------------------------
# Pass 2 (tiled path): out = (1 + f) * x, gate kept in f32.
# ---------------------------------------------------------------------------
def _scale_kernel(x_ref, g_ref, o_ref):
    # x_ref: (1, C, St); g_ref: (1, C, 1) f32; o_ref: (1, C, St).
    o_ref[...] = (x_ref[...].astype(jnp.float32) * g_ref[...]).astype(o_ref.dtype)


def se_block(x, w1, b1, w2, b2, *, max_block_bytes=None, fused_sample_limit=None):
    """x: (N, C, D, H, W); w1: (Cr, C); b1: (Cr,); w2: (C, Cr); b2: (C,)."""
    N, C, D, H, W = x.shape
    Cr = w1.shape[0]
    S = D * H * W
    x3 = x.reshape(N, C, S)

    blk_default, vmem_limit, fused_default = _gen_defaults()
    if max_block_bytes is None:
        max_block_bytes = blk_default
    if fused_sample_limit is None:
        fused_sample_limit = fused_default

    itemsize = jnp.dtype(x.dtype).itemsize
    # Sublane padding factor for sub-32-bit dtypes (bf16 packs 16 rows, int8 32).
    sub = 8 * max(1, 4 // max(itemsize, 1))
    eff_rows = _round_up(C, sub)
    S_lanes = _round_up(S, 128)

    w1f = w1.astype(jnp.float32)
    b1f = b1.astype(jnp.float32)
    w2f = w2.astype(jnp.float32)
    b2f = b2.astype(jnp.float32)

    # --------------------- fused single-pass path ---------------------------
    fused_bytes_f32 = eff_rows * S_lanes * 4     # f32-equivalent sample footprint
    if fused_bytes_f32 <= fused_sample_limit:
        kernel = functools.partial(_fused_kernel, inv_s=1.0 / float(S))
        out = pl.pallas_call(
            kernel,
            out_shape=jax.ShapeDtypeStruct((N, C, S), x.dtype),
            grid_spec=pltpu.PrefetchScalarGridSpec(
                num_scalar_prefetch=0,
                grid=(N,),
                in_specs=[
                    pl.BlockSpec((1, C, S), lambda n: (n, 0, 0)),
                    pl.BlockSpec((C, Cr), lambda n: (0, 0)),
                    pl.BlockSpec((1, Cr), lambda n: (0, 0)),
                    pl.BlockSpec((C, Cr), lambda n: (0, 0)),
                    pl.BlockSpec((C, 1), lambda n: (0, 0)),
                ],
                out_specs=pl.BlockSpec((1, C, S), lambda n: (n, 0, 0)),
            ),
            compiler_params=pltpu.CompilerParams(
                dimension_semantics=("parallel",),
                vmem_limit_bytes=vmem_limit,
            ),
        )(x3, w1f.T, b1f.reshape(1, Cr), w2f, b2f.reshape(C, 1))
        return out.reshape(N, C, D, H, W)

    # --------------------- two-pass tiled path -------------------------------
    lanes_budget = max(1, max_block_bytes // max(eff_rows * itemsize, 1))
    St = max(128, (lanes_budget // 128) * 128)
    St = min(St, S_lanes)
    n_tiles = -(-S // St)

    est_block = eff_rows * St * itemsize
    pass_vmem = max(vmem_limit, 6 * est_block + (4 << 20))  # large-C guard

    # 2-way split of the reduction tile axis so both v7x TCs get work even at
    # batch 1 (harmless on single-TC chips).  Phantom steps (odd n_tiles) read
    # a clamped, already-valid block and are fully masked in-kernel.
    n_split = 2 if n_tiles >= 2 else 1
    n_half = -(-n_tiles // n_split)

    def x_map_p1(n, p, s):
        t = p * n_half + s
        return (n, 0, jnp.minimum(t, n_tiles - 1))

    pool_kernel = functools.partial(_pool_sum_kernel, St=St, S=S, n_half=n_half)

    partials = pl.pallas_call(
        pool_kernel,
        out_shape=jax.ShapeDtypeStruct((N, n_split, C, 1), jnp.float32),
        grid_spec=pltpu.PrefetchScalarGridSpec(
            num_scalar_prefetch=0,
            grid=(N, n_split, n_half),
            in_specs=[pl.BlockSpec((1, C, St), x_map_p1)],
            out_specs=pl.BlockSpec((1, 1, C, 1), lambda n, p, s: (n, p, 0, 0)),
        ),
        compiler_params=pltpu.CompilerParams(
            dimension_semantics=("parallel", "parallel", "arbitrary"),
            vmem_limit_bytes=pass_vmem,
        ),
    )(x3)

    # Tiny excitation MLP in plain JAX (f32), residual folded into the gate.
    sums = jnp.sum(partials, axis=1)[:, :, 0]                     # (N, C)
    avg = sums / jnp.float32(S)
    h = jnp.maximum(avg @ w1f.T + b1f, 0.0)
    f = jnp.maximum(h @ w2f.T + b2f, 0.0)
    gate = (1.0 + f).reshape(N, C, 1).astype(jnp.float32)

    out = pl.pallas_call(
        _scale_kernel,
        out_shape=jax.ShapeDtypeStruct((N, C, S), x.dtype),
        grid_spec=pltpu.PrefetchScalarGridSpec(
            num_scalar_prefetch=0,
            grid=(N, n_tiles),
            in_specs=[
                pl.BlockSpec((1, C, St), lambda n, s: (n, 0, s)),
                pl.BlockSpec((1, C, 1), lambda n, s: (n, 0, 0)),
            ],
            out_specs=pl.BlockSpec((1, C, St), lambda n, s: (n, 0, s)),
        ),
        compiler_params=pltpu.CompilerParams(
            dimension_semantics=("parallel", "parallel"),
            vmem_limit_bytes=pass_vmem,
        ),
    )(x3, gate)

    return out.reshape(N, C, D, H, W)


def se_block_ref(x, w1, b1, w2, b2):
    """Pure-JAX reference of the PyTorch forward."""
    avg = jnp.mean(x, axis=(2, 3, 4))                          # (N, C)
    h = jnp.maximum(avg @ w1.T + b1, 0.0)                      # (N, Cr)
    f = jnp.maximum(h @ w2.T + b2, 0.0)                        # (N, C)
    f = f[:, :, None, None, None]
    return f * x + x


if __name__ == "__main__":
    key = jax.random.PRNGKey(0)
    kx, k1, kb1, k2, kb2, kx2, kx3 = jax.random.split(key, 7)

    # SEBlock(in_channels=8, r=2) -> reduced channels = 4.
    C, Cr = 8, 4
    # Conv3d(C, Cr, 1) weight is (Cr, C, 1, 1, 1) -> squeeze to (Cr, C).
    w1 = jax.random.normal(k1, (Cr, C), dtype=jnp.float32) * 0.1
    b1 = jax.random.normal(kb1, (Cr,), dtype=jnp.float32) * 0.1
    w2 = jax.random.normal(k2, (C, Cr), dtype=jnp.float32) * 0.1
    b2 = jax.random.normal(kb2, (C,), dtype=jnp.float32) * 0.1

    # Case A: fused single-pass path, spatial size a multiple of 128.
    x_a = jax.random.normal(kx, (2, C, 8, 8, 8), dtype=jnp.float32)
    out_a = jax.block_until_ready(se_block(x_a, w1, b1, w2, b2))
    ref_a = se_block_ref(x_a, w1, b1, w2, b2)
    assert out_a.shape == x_a.shape
    assert jnp.allclose(out_a, ref_a, atol=1e-5, rtol=1e-5), "mismatch (case A)"

    # Case B: fused path, ragged spatial size (S = 504, not a multiple of 128).
    x_b = jax.random.normal(kx2, (2, C, 7, 8, 9), dtype=jnp.float32)
    out_b = jax.block_until_ready(se_block(x_b, w1, b1, w2, b2))
    ref_b = se_block_ref(x_b, w1, b1, w2, b2)
    assert out_b.shape == x_b.shape
    assert jnp.allclose(out_b, ref_b, atol=1e-5, rtol=1e-5), "mismatch (case B)"

    # Case C: force the two-pass tiled path with an odd, ragged tile count
    # (S = 343, St = 128 -> 3 tiles): exercises the tail lane mask, the
    # clamped phantom split step, and partial output-block stores.
    x_c = jax.random.normal(kx3, (1, C, 7, 7, 7), dtype=jnp.float32)
    out_c = jax.block_until_ready(
        se_block(x_c, w1, b1, w2, b2, max_block_bytes=4096, fused_sample_limit=0))
    ref_c = se_block_ref(x_c, w1, b1, w2, b2)
    assert out_c.shape == x_c.shape
    assert jnp.allclose(out_c, ref_c, atol=1e-5, rtol=1e-5), "mismatch (case C)"

    print("KERNEL_OK")
</pallas_src>

<mosaic_0001>
module attributes {stable_mosaic.version = 11 : i64} {
  func.func @_fused_kernel(%arg0: i32, %arg1: memref<1x8x512xf32, #tpu.memory_space<vmem>>, %arg2: memref<8x4xf32, #tpu.memory_space<vmem>>, %arg3: memref<1x4xf32, #tpu.memory_space<vmem>>, %arg4: memref<8x4xf32, #tpu.memory_space<vmem>>, %arg5: memref<8x1xf32, #tpu.memory_space<vmem>>, %arg6: memref<1x8x512xf32, #tpu.memory_space<vmem>>) attributes {dimension_semantics = [#tpu.dimension_semantics<parallel>], iteration_bounds = array<i64: 2>, scalar_prefetch = 0 : i64, scratch_operands = 0 : i64, tpu.core_type = #tpu.core_type<tc>, window_params = [{transform_indices = @transform_0, window_bounds = array<i64: 1, 8, 512>}, {pipeline_mode = #tpu.pipeline_mode<synchronous>, transform_indices = @transform_1, window_bounds = array<i64: 8, 4>}, {pipeline_mode = #tpu.pipeline_mode<synchronous>, transform_indices = @transform_2, window_bounds = array<i64: 1, 4>}, {pipeline_mode = #tpu.pipeline_mode<synchronous>, transform_indices = @transform_3, window_bounds = array<i64: 8, 4>}, {pipeline_mode = #tpu.pipeline_mode<synchronous>, transform_indices = @transform_4, window_bounds = array<i64: 8, 1>}, {transform_indices = @transform_5, window_bounds = array<i64: 1, 8, 512>}]} {
    %c0 = arith.constant 0 : index
    %c0_0 = arith.constant 0 : index
    %c0_1 = arith.constant 0 : index
    %0 = vector.load %arg1[%c0, %c0_0, %c0_1] : memref<1x8x512xf32, #tpu.memory_space<vmem>>, vector<1x8x512xf32>
    %1 = vector.shape_cast %0 : vector<1x8x512xf32> to vector<8x512xf32>
    %cst = arith.constant dense<0.000000e+00> : vector<8xf32>
    %2 = vector.multi_reduction <add>, %1, %cst [1] : vector<8x512xf32> to vector<8xf32>
    %3 = vector.shape_cast %2 : vector<8xf32> to vector<8x1xf32>
    %cst_2 = arith.constant 0.001953125 : f32
    %4 = vector.broadcast %cst_2 : f32 to vector<8x1xf32>
    %5 = arith.mulf %3, %4 : vector<8x1xf32>
    %c0_3 = arith.constant 0 : index
    %c0_4 = arith.constant 0 : index
    %6 = vector.load %arg2[%c0_3, %c0_4] : memref<8x4xf32, #tpu.memory_space<vmem>>, vector<8x4xf32>
    %7 = vector.broadcast %5 : vector<8x1xf32> to vector<8x4xf32>
    %8 = arith.mulf %6, %7 : vector<8x4xf32>
    %cst_5 = arith.constant dense<0.000000e+00> : vector<4xf32>
    %9 = vector.multi_reduction <add>, %8, %cst_5 [0] : vector<8x4xf32> to vector<4xf32>
    %10 = vector.shape_cast %9 : vector<4xf32> to vector<1x4xf32>
    %c0_6 = arith.constant 0 : index
    %c0_7 = arith.constant 0 : index
    %11 = vector.load %arg3[%c0_6, %c0_7] : memref<1x4xf32, #tpu.memory_space<vmem>>, vector<1x4xf32>
    %12 = arith.addf %10, %11 : vector<1x4xf32>
    %cst_8 = arith.constant 0.000000e+00 : f32
    %13 = vector.broadcast %cst_8 : f32 to vector<1x4xf32>
    %14 = arith.maximumf %12, %13 : vector<1x4xf32>
    %c0_9 = arith.constant 0 : index
    %c0_10 = arith.constant 0 : index
    %15 = vector.load %arg4[%c0_9, %c0_10] : memref<8x4xf32, #tpu.memory_space<vmem>>, vector<8x4xf32>
    %16 = vector.broadcast %14 : vector<1x4xf32> to vector<8x4xf32>
    %17 = arith.mulf %15, %16 : vector<8x4xf32>
    %cst_11 = arith.constant dense<0.000000e+00> : vector<8xf32>
    %18 = vector.multi_reduction <add>, %17, %cst_11 [1] : vector<8x4xf32> to vector<8xf32>
    %19 = vector.shape_cast %18 : vector<8xf32> to vector<8x1xf32>
    %c0_12 = arith.constant 0 : index
    %c0_13 = arith.constant 0 : index
    %20 = vector.load %arg5[%c0_12, %c0_13] : memref<8x1xf32, #tpu.memory_space<vmem>>, vector<8x1xf32>
    %21 = arith.addf %19, %20 : vector<8x1xf32>
    %cst_14 = arith.constant 0.000000e+00 : f32
    %22 = vector.broadcast %cst_14 : f32 to vector<8x1xf32>
    %23 = arith.maximumf %21, %22 : vector<8x1xf32>
    %cst_15 = arith.constant 1.000000e+00 : f32
    %24 = vector.broadcast %cst_15 : f32 to vector<8x1xf32>
    %25 = arith.addf %24, %23 : vector<8x1xf32>
    %26 = vector.broadcast %25 : vector<8x1xf32> to vector<8x512xf32>
    %27 = arith.mulf %1, %26 : vector<8x512xf32>
    %28 = vector.shape_cast %27 : vector<8x512xf32> to vector<1x8x512xf32>
    %c0_16 = arith.constant 0 : index
    %c0_17 = arith.constant 0 : index
    %c0_18 = arith.constant 0 : index
    %29 = vector.load %arg6[%c0_16, %c0_17, %c0_18] : memref<1x8x512xf32, #tpu.memory_space<vmem>>, vector<1x8x512xf32>
    tpu.vector_store %arg6[%c0_16, %c0_17, %c0_18], %28 {strides = array<i32>} : memref<1x8x512xf32, #tpu.memory_space<vmem>>, vector<1x8x512xf32>,
    return
  }
  func.func @transform_0(%arg0: i32) -> (i32, i32, i32) {
    %c0_i32 = arith.constant 0 : i32
    %c0_i32_0 = arith.constant 0 : i32
    %c0_i32_1 = arith.constant 0 : i32
    return %arg0, %c0_i32, %c0_i32_0 : i32, i32, i32
  }
  func.func @transform_1(%arg0: i32) -> (i32, i32) {
    %c0_i32 = arith.constant 0 : i32
    %c0_i32_0 = arith.constant 0 : i32
    %c0_i32_1 = arith.constant 0 : i32
    return %c0_i32, %c0_i32_0 : i32, i32
  }
  func.func @transform_2(%arg0: i32) -> (i32, i32) {
    %c0_i32 = arith.constant 0 : i32
    %c0_i32_0 = arith.constant 0 : i32
    %c0_i32_1 = arith.constant 0 : i32
    return %c0_i32, %c0_i32_0 : i32, i32
  }
  func.func @transform_3(%arg0: i32) -> (i32, i32) {
    %c0_i32 = arith.constant 0 : i32
    %c0_i32_0 = arith.constant 0 : i32
    %c0_i32_1 = arith.constant 0 : i32
    return %c0_i32, %c0_i32_0 : i32, i32
  }
  func.func @transform_4(%arg0: i32) -> (i32, i32) {
    %c0_i32 = arith.constant 0 : i32
    %c0_i32_0 = arith.constant 0 : i32
    %c0_i32_1 = arith.constant 0 : i32
    return %c0_i32, %c0_i32_0 : i32, i32
  }
  func.func @transform_5(%arg0: i32) -> (i32, i32, i32) {
    %c0_i32 = arith.constant 0 : i32
    %c0_i32_0 = arith.constant 0 : i32
    %c0_i32_1 = arith.constant 0 : i32
    return %arg0, %c0_i32, %c0_i32_0 : i32, i32, i32
  }
}

</mosaic_0001>

<bundles_post_ra>
// kernel: tpu_custom_call.1
= control target key start
LH: loop header
LB: loop body
LE: loop exit
PB: predicated region body
PF: predicated region fallthrough
CT: control target
= control target key end

     0   :  { %10 = vsyncpa [#allocation3], 0  ;;  %s1122_s0 = inlined_call_operand.hbm [shape: f32[2,8,512], index: 0, kind: input, shape index: {}]   ;;  %s1123_s1 = inlined_call_operand.hbm [shape: f32[8,4], index: 1, kind: input, shape index: {}]   ;;  %s1124_s2 = inlined_call_operand.hbm [shape: f32[1,4], index: 2, kind: input, shape index: {}]   ;;  %s1125_s3 = inlined_call_operand.hbm [shape: f32[8,4], index: 3, kind: input, shape index: {}]   ;;  %s1126_s4 = inlined_call_operand.hbm [shape: f32[8,1], index: 4, kind: input, shape index: {}]   ;;  %s1127_s5 = inlined_call_operand.hbm [shape: f32[2,8,512], index: 5, kind: output, shape index: {}]  }
   0x1   :  { %12 = vsyncpa [#allocation3 + $0x1], 0 }
   0x2   :  { %13 = vsyncpa [#allocation6], 0 }
   0x3   :  { %14 = vsyncpa [#allocation9], 0 }
   0x4   :  { %15 = vsyncpa [#allocation4], 0 }
   0x5   :  { %17 = vsyncpa [#allocation4 + $0x1], 0  ;;  %s832_s18 = smov 0   ;;  %s834_s19 = smov 0  }
   0x6   :  { %s836_s20 = smov 0   ;;  %s838_s21 = smov 0  }
   0x7 LB: > { %s795_s22 = smov [#allocation5]   ;;  %s853_s24 = sadd.s32 4294967295, %s793_s21   ;;  %s793_s21 = sphi %s838_s21, %s1151_s21   ;;  %s789_s20 = sphi %s836_s20, %s1150_s20   ;;  %s785_s19 = sphi %s834_s19, %s1149_s19   ;;  %s781_s18 = sphi %s832_s18, %s1148_s18  }
   0x8   : > { %s177_s23 = sshll.u32 %s795_s22, 4  ;;  %p464_p0 = scmp.ge.s32.totalorder %s793_s21, 1  ;;  %s858_s23 = int_to_ptr.vmem [resolvable:$true] %s177_s23 }
   0x9   : > { %p1128_p1 = scmp.eq.s32.totalorder %s853_s24, 0  ;;  %p164_p2 = scmp.lt.s32.totalorder %s793_s21, 3 }
   0xa   : > { %s796_s26 = smov [#allocation8]   ;;  %s797_s28 = smov [#allocation7]  }
   0xb   : > { %p860_p3 = pnand %p464_p0, %p164_p2  ;;  %s199_s27 = sshll.u32 %s796_s26, 4  ;;  %s867_s27 = int_to_ptr.vmem [resolvable:$true] %s199_s27 }
   0xc   : > { %s188_s29 = sshll.u32 %s797_s28, 4  ;;  %s798_s6 = smov [#allocation10]   ;;  %s875_s29 = int_to_ptr.vmem [resolvable:$true] %s188_s29 }
   0xd   : > { %s1131_s25 = scalar_select %p860_p3, 1, 0 }
   0xe   : > { %p507_p5 = pneg %p860_p3  ;;  %s877_s7 = sshll.u32 %s798_s6, 4  ;;  %s211_s7 = int_to_ptr.vmem [resolvable:$true] %s877_s7 }
   0xf   : > { %s577_s10 = scalar_lea.hbm %s1123_s1, 128 }
  0x10   : > { %p871_p6 = pnand %p507_p5, %p1128_p1  ;;  %p578_p7 = scmp.ne.s32.totalorder %s1123_s1, %s577_s10 }
  0x11   : > { %p584_p11 = scmp.lt.u32.totalorder %s577_s10, %s1123_s1 }
  0x12   : > { %p887_p8 = pneg %p871_p6 }
  0x14   : > { %p580_p9 = pnand %p887_p8, %p578_p7 }
  0x16   : > { %p581_p10 = pneg %p580_p9 }
  0x18   : > { %p586_p12 = pnand %p584_p11, %p581_p10 }
  0x1a   : > { %589 = shalt.err (!%p586_p12)
}
  0x1b   : > { %s590_s16 = scalar_lea.vmem %s858_s23, 128  ;;  %p598_p5 = scmp.lt.s32.totalorder %s858_s23, %s858_s23 }
  0x1c   : > { %p591_p13 = scmp.ne.s32.totalorder %s858_s23, %s590_s16  ;;  %p599_p4 = scmp.lt.s32.totalorder %s590_s16, %s590_s16 }
  0x1e   : > { %p593_p0 = pnand %p591_p13, %p887_p8  ;;  %p600_p7 = por %p599_p4, %p598_p5 }
  0x20   : > { %p594_p2 = pneg %p593_p0 }
  0x22   : > { %p601_p9 = pnand %p600_p7, %p594_p2 }
  0x24   : > { %604 = shalt.err (!%p601_p9)
}
  0x25   : > { %510 = dma.hbm_to_vmem [thread:$0]  (!%p871_p6), %s1123_s1, 128, %s858_s23, [#allocation6]  }
  0x26   : > { %s605_s6 = scalar_lea.hbm %s1125_s3, 128 }
  0x27   : > { %p606_p10 = scmp.ne.s32.totalorder %s1125_s3, %s605_s6  ;;  %p612_p12 = scmp.lt.u32.totalorder %s605_s6, %s1125_s3 }
  0x29   : > { %p608_p4 = pnand %p606_p10, %p887_p8 }
  0x2b   : > { %p609_p11 = pneg %p608_p4 }
  0x2d   : > { %p614_p13 = pnand %p612_p12, %p609_p11 }
  0x2f   : > { %617 = shalt.err (!%p614_p13)
}
  0x30   : > { %s618_s23 = scalar_lea.vmem %s867_s27, 128  ;;  %p626_p7 = scmp.lt.s32.totalorder %s867_s27, %s867_s27 }
  0x31   : > { %p619_p0 = scmp.ne.s32.totalorder %s867_s27, %s618_s23  ;;  %p627_p9 = scmp.lt.s32.totalorder %s618_s23, %s618_s23 }
  0x33   : > { %p621_p2 = pnand %p619_p0, %p887_p8  ;;  %p628_p10 = por %p627_p9, %p626_p7 }
  0x35   : > { %p622_p5 = pneg %p621_p2 }
  0x37   : > { %p629_p4 = pnand %p628_p10, %p622_p5 }
  0x39   : > { %632 = shalt.err (!%p629_p4)
}
  0x3a   : > { %516 = dma.hbm_to_vmem [thread:$0]  (!%p871_p6), %s1125_s3, 128, %s867_s27, [#allocation9]  }
  0x3b   : > { %s633_s17 = scalar_lea.hbm %s1124_s2, 16 }
  0x3c   : > { %p634_p11 = scmp.ne.s32.totalorder %s1124_s2, %s633_s17  ;;  %p640_p0 = scmp.lt.u32.totalorder %s633_s17, %s1124_s2 }
  0x3e   : > { %p636_p12 = pnand %p634_p11, %p887_p8 }
  0x40   : > { %p637_p13 = pneg %p636_p12 }
  0x42   : > { %p642_p2 = pnand %p640_p0, %p637_p13 }
  0x44   : > { %645 = shalt.err (!%p642_p2)
}
  0x45   : > { %s646_s27 = scalar_lea.vmem %s875_s29, 16  ;;  %s653_s8 = scalar_lea.vmem %s875_s29, 32 }
  0x46   : > { %p647_p5 = scmp.ne.s32.totalorder %s875_s29, %s646_s27  ;;  %p654_p10 = scmp.lt.s32.totalorder %s875_s29, %s875_s29 }
  0x47   : > { %p655_p4 = scmp.lt.s32.totalorder %s653_s8, %s646_s27 }
  0x48   : > { %p649_p7 = pnand %p647_p5, %p887_p8 }
  0x49   : > { %p656_p11 = por %p655_p4, %p654_p10 }
  0x4a   : > { %p650_p9 = pneg %p649_p7 }
  0x4c   : > { %p657_p12 = pnand %p656_p11, %p650_p9 }
  0x4e   : > { %660 = shalt.err (!%p657_p12)
}
  0x4f   : > { %513 = dma.hbm_to_vmem [thread:$0]  (!%p871_p6), %s1124_s2, 16, %s875_s29, [#allocation6]  }
  0x50   : > { %s661_s12 = scalar_lea.hbm %s1126_s4, 128 }
  0x51   : > { %p662_p13 = scmp.ne.s32.totalorder %s1126_s4, %s661_s12  ;;  %p668_p5 = scmp.lt.u32.totalorder %s661_s12, %s1126_s4 }
  0x53   : > { %p664_p0 = pnand %p662_p13, %p887_p8 }
  0x55   : > { %p665_p2 = pneg %p664_p0 }
  0x57   : > { %p670_p7 = pnand %p668_p5, %p665_p2 }
  0x59   : > { %673 = shalt.err (!%p670_p7)
}
  0x5a   : > { %s674_s22 = scalar_lea.vmem %s211_s7, 128  ;;  %p682_p11 = scmp.lt.s32.totalorder %s211_s7, %s211_s7 }
  0x5b   : > { %p675_p9 = scmp.ne.s32.totalorder %s211_s7, %s674_s22  ;;  %p683_p12 = scmp.lt.s32.totalorder %s674_s22, %s674_s22 }
  0x5d   : > { %p677_p10 = pnand %p675_p9, %p887_p8  ;;  %p684_p1 = por %p683_p12, %p682_p11 }
  0x5f   : > { %p678_p4 = pneg %p677_p10 }
  0x61   : > { %p685_p3 = pnand %p684_p1, %p678_p4 }
  0x63   : > { %688 = shalt.err (!%p685_p3)
}
  0x64   : > { %519 = dma.hbm_to_vmem [thread:$0]  (!%p871_p6), %s1126_s4, 128, %s211_s7, [#allocation9]  }
  0x65   : > { %s463_s13 = sadd.s32 4294967294, %s793_s21   ;;  %s976_s30 = sadd.s32 1, %s793_s21  }
  0x66   : > { %s27_s28 = ssub.s32 %s793_s21, %s976_s30  ;;  %s30_s6 = sadd.s32 1, %s789_s20 }
  0x67   : > { %p28_p1 = scmp.eq.s32.totalorder %s27_s28, 0  ;;  %p37_p3 = scmp.ne.s32.totalorder %s789_s20, %s785_s19 }
  0x68   : > { %p38_p8 = scmp.eq.s32.totalorder %s793_s21, 0  ;;  %p43_p13 = scmp.ne.s32.totalorder %s785_s19, %s781_s18 }
  0x69   : > { %s987_s27 = scalar_select %p28_p1, %s789_s20, %s30_s6  }
  0x6a   : > { %p989_p0 = por %p38_p8, %p37_p3  ;;  %p1135_p2 = scmp.eq.s32.totalorder %s853_s24, 0 }
  0x6b   : > { %p151_p5 = scmp.eq.s32.totalorder %s853_s24, 1  ;;  %p157_p7 = scmp.eq.s32.totalorder %s463_s13, 1 }
  0x6c   : > { %p995_p6 = por %p1135_p2, %p43_p13  ;;  %p532_p9 = scmp.lt.s32.totalorder %s793_s21, 2 }
  0x6d   : > { %s221_s9 = sand.u32 1, %s789_s20   ;;  %p1002_p10 = por %p151_p5, %p37_p3 }
  0x6e   : > { %p1006_p4 = por %p157_p7, %p43_p13  ;;  %s470_s23 = sshll.u32 %s221_s9, 5 }
  0x6f   : > { %s1137_s10 = scalar_select %p1002_p10, 1, 0 }
  0x70   : > { %s1138_s11 = scalar_select %p1006_p4, 1, 0 }
  0x71   : > { %s485_s12 = sshll.u32 %s793_s21, 9  ;;  %s225_s17 = scalar_lea.vmem [#allocation2], %s470_s23 }
  0x72   : > { %s1014_s16 = scalar_lea.hbm %s1122_s0, %s485_s12  ;;  %s233_s22 = sshll.u32 %s225_s17, 4  ;;  %s1016_s22 = int_to_ptr.vmem [resolvable:$true] %s233_s22 }
  0x73   : > { %p1020_p11 = pnand %p532_p9, %p989_p0  ;;  %s222_s26 = scalar_lea.sflag [#allocation3], %s221_s9 }
  0x74   : > { %s689_s13 = scalar_lea.hbm %s1014_s16, 512  ;;  %s694_s23 = scalar_lea.hbm %s1122_s0, 1024 }
  0x75   : > { %p690_p12 = scmp.ne.s32.totalorder %s1014_s16, %s689_s13  ;;  %p691_p1 = pneg %p1020_p11 }
  0x76   : > { %p695_p13 = scmp.lt.u32.totalorder %s1014_s16, %s1122_s0  ;;  %p696_p0 = scmp.lt.u32.totalorder %s694_s23, %s689_s13 }
  0x77   : > { %p692_p3 = pnand %p691_p1, %p690_p12  ;;  %p698_p5 = scmp.lt.u32.totalorder %s689_s13, %s1014_s16 }
  0x78   : > { %p697_p2 = por %p696_p0, %p695_p13 }
  0x79   : > { %p693_p8 = pneg %p692_p3 }
  0x7a   : > { %p699_p7 = por %p698_p5, %p697_p2 }
  0x7c   : > { %p700_p9 = pnand %p699_p7, %p693_p8 }
  0x7e   : > { %703 = shalt.err (!%p700_p9)
}
  0x7f   : > { %s704_s9 = scalar_lea.vmem %s1016_s22, 512  ;;  %s799_s14 = smov [#allocation2]  }
  0x80   : > { %p705_p12 = scmp.ne.s32.totalorder %s1016_s22, %s704_s9  ;;  %s709_s15 = sshll.u32 %s799_s14, 4  ;;  %s710_s15 = int_to_ptr.vmem [resolvable:$false] %s709_s15 }
  0x81   : > { %s711_s17 = scalar_lea.vmem %s710_s15, 1024  ;;  %p712_p10 = scmp.lt.s32.totalorder %s1016_s22, %s710_s15 }
  0x82   : > { %p707_p3 = pnand %p705_p12, %p691_p1  ;;  %p713_p13 = scmp.lt.s32.totalorder %s711_s17, %s704_s9 }
  0x84   : > { %p708_p4 = pneg %p707_p3  ;;  %p714_p0 = por %p713_p13, %p712_p10 }
  0x86   : > { %p715_p2 = pnand %p714_p0, %p708_p4 }
  0x88   : > { %718 = shalt.err (!%p715_p2)
}
  0x89   : > { %523 = dma.hbm_to_vmem [thread:$0]  (!%p1020_p11), %s1014_s16, 512, %s1016_s22, %s222_s26  }
  0x8a   : > { %p1140_p8 = scmp.ne.s32.totalorder %s1131_s25, 0 }
  0x8b   : > { %s1052_s13 = sand.u32 (!%p1140_p8), 1, %s785_s19  }
  0x8c   : > { %242 = sbr.rel (%p1140_p8) target bundleno = 623 (0x26f), region = 40  ;;  %s474_s28 = sshll.u32 (!%p1140_p8), %s1052_s13, 5 }
  0x8d   : > { %s245_s6 = scalar_lea.sflag (!%p1140_p8), [#allocation3], %s1052_s13  ;;  %s248_s23 = scalar_lea.vmem (!%p1140_p8), [#allocation2], %s474_s28 }
  0x93   : > { %764 = dma.done.wait (%p995_p6), %s245_s6, 512  }
  0x94   : > { %766 = vsyncadd (%p995_p6), %s245_s6, 4294966784  ;;  %p1141_p10 = scmp.eq.s32.totalorder %s853_s24, 0 }
  0x96   : > { %768 = dma.done.wait (%p1141_p10), [#allocation6], 144   ;;  %p1142_p4 = pmov %p1141_p10 }
  0x98   : > { %770 = vsyncadd (%p1142_p4), [#allocation6], 4294967152  ;;  %p1143_p11 = pmov %p1142_p4 }
  0x99   : > { %p1144_p1 = pmov %p1142_p4 }
  0x9a   : > { %772 = dma.done.wait (%p1143_p11), [#allocation9], 256  }
  0x9b   : > { %774 = vsyncadd (%p1144_p1), [#allocation9], 4294967040  ;;  %v291_v0 = vld [vmem:[%s248_s23] sm:$0xff]  ;;  %v292_v1 = vld [vmem:[%s248_s23 + $0x8] sm:$0xff]  ;;  %vm303_vm0 = vcmask 31744   ;;  %v315_v15 = vlaneseq  ;;  %v800_v28 = vmov 0  }
  0x9c   : > { %v293_v2 = vld [vmem:[%s248_s23 + $0x10] sm:$0xff]  ;;  %v295_v3 = vadd.f32 %v292_v1, %v291_v0  ;;  %v294_v4 = vld [vmem:[%s248_s23 + $0x18] sm:$0xff]  ;;  %v301_v7 = vld [vmem:[#allocation5] sm:$0xff]  ;;  %575 = vset.pattern.permute.xlu1 %v800_v28  ;;  %576 = vset.pattern.permute.xlu0 %v800_v28  ;;  %s486_s25 = sshll.u32 %s853_s24, 9  ;;  %s290_s7 = scalar_lea.vmem [#allocation11], %s474_s28 }
  0x9d   : > { %v316_v18 = vshrl.u32 %v315_v15, 7  ;;  %v311_v19 = vld [vmem:[#allocation7] sm:$0x1]  ;;  %v314_v24 = vld [vmem:[#allocation8] sm:$0xff]  ;;  %v323_v29 = vld [vmem:[#allocation10] sm:$0xff]  ;;  %s355_s16 = sshll.u32 %s290_s7, 4  ;;  %s1078_s26 = scalar_lea.hbm %s1127_s5, %s486_s25  ;;  %s1080_s16 = int_to_ptr.vmem [resolvable:$true] %s355_s16 }
  0x9e   : > { %v296_v5 = vadd.f32 %v295_v3, %v293_v2  ;;  %s341_s24 = scalar_lea.sflag [#allocation4], %s1052_s13  ;;  %s719_s8 = scalar_lea.vmem %s1080_s16, 512 }
  0x9f   : > { %v317_v22 = vsub.s32 0, %v316_v18  ;;  %p720_p6 = scmp.ne.s32.totalorder %s1080_s16, %s719_s8  ;;  %p1145_p5 = scmp.ne.s32.totalorder %s1137_s10, 0 }
  0xa0   : > { %v297_v6 = vadd.f32 %v296_v5, %v294_v4  ;;  %s801_s12 = smov [#allocation11]  }
  0xa1   : > { %p721_p7 = pnand %p720_p6, %p1145_p5  ;;  %s723_s9 = sshll.u32 %s801_s12, 4  ;;  %s724_s9 = int_to_ptr.vmem [resolvable:$false] %s723_s9 }
  0xa2   : > { %298 = vadd.xlane.f32.xlu0 %v297_v6  ;;  %s725_s14 = scalar_lea.vmem %s724_s9, 1024  ;;  %p726_p12 = scmp.lt.s32.totalorder %s1080_s16, %s724_s9 }
  0xa3   : > { %p722_p9 = pneg %p721_p7  ;;  %p727_p3 = scmp.lt.s32.totalorder %s725_s14, %s719_s8 }
  0xa5   : > { %p728_p13 = por %p727_p3, %p726_p12 }
  0xa7   : > { %p729_p0 = pnand %p728_p13, %p722_p9 }
 0x12f   : > { %v299_v8 = vpop.xlane.xlu0 %298 }
 0x130   : > { %v300_v9 = vmul.f32 0.001953125, %v299_v8 }
 0x132   : > { %v302_v10 = vmul.f32 %v301_v7, %v300_v9 }
 0x134   : > { %v304_v11 = vsel %vm303_vm0, %v302_v10, 0.0 }
 0x135   : > { %v305_v12 = vrot.slane %v304_v11, 4 }
 0x137   : > { %v306_v13 = vadd.f32 %v305_v12, %v304_v11 }
 0x139   : > { %v307_v14 = vrot.slane %v306_v13, 2 }
 0x13b   : > { %v308_v16 = vadd.f32 %v307_v14, %v306_v13 }
 0x13d   : > { %v309_v17 = vrot.slane %v308_v16, 1 }
 0x13f   : > { %v310_v20 = vadd.f32 %v309_v17, %v308_v16 }
 0x141   : > { %v312_v21 = vadd.f32 %v311_v19, %v310_v20 }
 0x143   : > { %v313_v23 = vmax.f32 %v312_v21, 0.0 }
 0x145   : > { %v318_v25 = vrot.slane %v313_v23, %v317_v22 }
 0x147   : > { %v319_v26 = vmul.f32 %v318_v25, %v314_v24 }
 0x149   : > { %v320_v27 = vsel %vm303_vm0, %v319_v26, 0.0 }
 0x14a   : > { %321 = vadd.xlane.f32.xlu0 %v320_v27 }
 0x1d7   : > { %v322_v30 = vpop.xlane.xlu0 %321 }
 0x1d8   : > { %v324_v31 = vadd.f32 %v323_v29, %v322_v30 }
 0x1da   : > { %v325_v32 = vmax.f32 %v324_v31, 0.0 }
 0x1dc   : > { %v326_v33 = vadd.f32 1.0, %v325_v32 }
 0x1de   : > { %329 = vperm.xlu1 %575, %v326_v33  }
 0x25d   : > { %v330_v34 = vpop.permute.xlu1 %329 }
 0x25e   : > { %v332_v35 = vmul.f32 %v330_v34, %v291_v0  ;;  %v333_v36 = vmul.f32 %v330_v34, %v292_v1  ;;  %v334_v37 = vmul.f32 %v330_v34, %v293_v2  ;;  %v335_v38 = vmul.f32 %v330_v34, %v294_v4 }
 0x260   : > { %336 = vst [vmem:[%s290_s7] sm:$0xff] %v332_v35  ;;  %337 = vst [vmem:[%s290_s7 + $0x8] sm:$0xff] %v333_v36 }
 0x261   : > { %338 = vst [vmem:[%s290_s7 + $0x10] sm:$0xff] %v334_v37  ;;  %339 = vst [vmem:[%s290_s7 + $0x18] sm:$0xff] %v335_v38 }
 0x262   : > { %732 = shalt.err (!%p729_p0)
}
 0x263   : > { %s733_s15 = scalar_lea.hbm %s1078_s26, 512  ;;  %s737_s28 = scalar_lea.hbm %s1127_s5, 1024 }
 0x264   : > { %p734_p2 = scmp.ne.s32.totalorder %s1078_s26, %s733_s15  ;;  %p738_p4 = scmp.lt.u32.totalorder %s1078_s26, %s1127_s5 }
 0x265   : > { %p739_p11 = scmp.lt.u32.totalorder %s737_s28, %s733_s15  ;;  %p741_p6 = scmp.lt.u32.totalorder %s733_s15, %s1078_s26 }
 0x266   : > { %p735_p8 = pnand %p734_p2, %p1145_p5 }
 0x267   : > { %p740_p1 = por %p739_p11, %p738_p4 }
 0x268   : > { %p736_p10 = pneg %p735_p8 }
 0x269   : > { %p742_p7 = por %p741_p6, %p740_p1 }
 0x26b   : > { %p743_p9 = pnand %p742_p7, %p736_p10 }
 0x26d   : > { %746 = shalt.err (!%p743_p9)
}
 0x26e   : > { %505 = dma.vmem_to_hbm [thread:$0]  (%p1145_p5), %s1080_s16, 512, %s1078_s26, %s341_s24  }
 0x26f PF: > { %s367_s25 = sand.u32 1, %s781_s18   ;;  %p1146_p12 = scmp.ne.s32.totalorder %s1138_s11, 0 }
 0x270   : > { %p1147_p3 = scmp.ge.s32.totalorder %s793_s21, 2  ;;  %s368_s7 = scalar_lea.sflag [#allocation4], %s367_s25 }
 0x272   : > { %p525_p13 = pnand %p1147_p3, %p1146_p12 }
 0x274   : > { %776 = dma.done.wait (!%p525_p13), %s368_s7, 512  }
 0x275   : > { %778 = vsyncadd (!%p525_p13), %s368_s7, 4294966784  ;;  %p20_p0 = scmp.ge.s32.totalorder %s976_s30, 4   ;;  %s1148_s18 = smov %s785_s19 }
 0x276   : > { %s1149_s19 = smov %s789_s20  ;;  %s1150_s20 = smov %s987_s27 }
 0x277   : > { %s1151_s21 = smov %s976_s30  ;;  %22 = sbr.rel (!%p20_p0) target bundleno = 7 (0x7), region = 101 }
 0x27e   :  { %373 = vsyncpa [#allocation3], 1 }
 0x27f   :  { %375 = vsyncpa [#allocation3 + $0x1], 1 }
 0x280   :  { %376 = vsyncpa [#allocation6], 1 }
 0x281   :  { %377 = vsyncpa [#allocation9], 1 }
 0x282   :  { %378 = vsyncpa [#allocation4], 1 }
 0x283   :  { %380 = vsyncpa [#allocation4 + $0x1], 1 }

</bundles_post_ra>
